<compile_context>
chip_gen: v7x
topology: tpu7x:2x2x1
jax: 0.10.0
libtpu: 0.0.40
codegen_flags: <defaults>
</compile_context>

<pallas_src>
import math
from functools import partial

import jax
import jax.numpy as jnp
from jax.experimental import pallas as pl
from jax.experimental.pallas import tpu as pltpu


# ---------------------------------------------------------------------------
# hparams (nuwave2 defaults)
# ---------------------------------------------------------------------------
LOGSNR_MIN = -20.0
LOGSNR_MAX = 20.0
LOGSNR_B = math.atan(math.exp(-LOGSNR_MAX / 2.0))
LOGSNR_A = math.atan(math.exp(-LOGSNR_MIN / 2.0)) - LOGSNR_B


# ---------------------------------------------------------------------------
# Pallas kernel: SNR math on t, packed (3, B) output
#   row 0: logsnr, row 1: alpha_sq, row 2: sigma_sq
# ---------------------------------------------------------------------------
def _diffusion_snr_kernel(t_ref, out_ref, *, logsnr_a, logsnr_b):
    # t_ref: (1, B) f32 in VMEM
    t = t_ref[...]
    arg = logsnr_a * t + logsnr_b
    # tan via sin/cos (VPU + EUP friendly; exact divide keeps log(tan) accurate)
    tan_v = jnp.sin(arg) / jnp.cos(arg)
    logsnr = -2.0 * jnp.log(tan_v)

    alpha_sq = jax.nn.sigmoid(logsnr)
    sigma_sq = 1.0 - alpha_sq          # == sigmoid(-logsnr), saves one EUP op

    out_ref[0:1, :] = logsnr
    out_ref[1:2, :] = alpha_sq
    out_ref[2:3, :] = sigma_sq


def diffusion_forward(y, y_l, band, t, z):
    """JAX wrapper reproducing Diffusion.forward(y, y_l, band, t, z).

    Returns (noise, logsnr, (alpha_sq, sigma_sq)) with the same shapes/dtypes
    as the PyTorch module: noise (B, T), logsnr/alpha_sq/sigma_sq (B,).
    """
    del y, y_l, band  # only consumed by the (mocked) inner model when z is None
    B = t.shape[0]
    t2d = t.reshape(1, B).astype(jnp.float32)

    kernel = partial(_diffusion_snr_kernel, logsnr_a=LOGSNR_A, logsnr_b=LOGSNR_B)

    vmem = pl.BlockSpec(memory_space=pltpu.MemorySpace.VMEM)
    packed = pl.pallas_call(
        kernel,
        out_shape=jax.ShapeDtypeStruct((3, B), jnp.float32),
        in_specs=[vmem],
        out_specs=vmem,
    )(t2d)

    logsnr = packed[0]
    alpha_sq = packed[1]
    sigma_sq = packed[2]

    # z is not None -> noise = z : pure passthrough, no kernel traffic at all.
    noise = z
    return noise, logsnr, (alpha_sq, sigma_sq)


# ---------------------------------------------------------------------------
# Pure-JAX reference (for sanity checking)
# ---------------------------------------------------------------------------
def _reference_forward(t, z):
    logsnr = -2.0 * jnp.log(jnp.tan(LOGSNR_A * t + LOGSNR_B))
    alpha_sq = jax.nn.sigmoid(logsnr)
    sigma_sq = jax.nn.sigmoid(-logsnr)
    return z, logsnr, (alpha_sq, sigma_sq)


if __name__ == "__main__":
    key = jax.random.PRNGKey(0)
    k_y, k_yl, k_band, k_t, k_z = jax.random.split(key, 5)

    B, T, F = 8, 256, 16
    y = jax.random.normal(k_y, (B, T), dtype=jnp.float32)
    y_l = jax.random.normal(k_yl, (B, T), dtype=jnp.float32)
    band = (jax.random.uniform(k_band, (B, F)) > 0.5).astype(jnp.float32)
    # t in (0, 1), bounded away from 0/1 so tan() stays well conditioned
    t = jax.random.uniform(k_t, (B,), minval=0.05, maxval=0.95, dtype=jnp.float32)
    z = jax.random.normal(k_z, (B, T), dtype=jnp.float32)

    noise, logsnr, (alpha_sq, sigma_sq) = diffusion_forward(y, y_l, band, t, z)
    jax.block_until_ready((noise, logsnr, alpha_sq, sigma_sq))

    ref_noise, ref_logsnr, (ref_a, ref_s) = _reference_forward(t, z)
    assert jnp.allclose(noise, ref_noise)
    assert jnp.allclose(logsnr, ref_logsnr, atol=1e-4, rtol=1e-4)
    assert jnp.allclose(alpha_sq, ref_a, atol=1e-5, rtol=1e-5)
    assert jnp.allclose(sigma_sq, ref_s, atol=1e-5, rtol=1e-5)

    print("KERNEL_OK")
</pallas_src>

<mosaic_0001>
module attributes {stable_mosaic.version = 11 : i64} {
  func.func @_diffusion_snr_kernel(%arg0: memref<1x8xf32, #tpu.memory_space<vmem>>, %arg1: memref<3x8xf32, #tpu.memory_space<vmem>>) attributes {dimension_semantics = [], scalar_prefetch = 0 : i64, scratch_operands = 0 : i64, tpu.core_type = #tpu.core_type<tc>} {
    %c0 = arith.constant 0 : index
    %c0_0 = arith.constant 0 : index
    %0 = vector.load %arg0[%c0, %c0_0] : memref<1x8xf32, #tpu.memory_space<vmem>>, vector<1x8xf32>
    %cst = arith.constant 1.57070553 : f32
    %1 = vector.broadcast %cst : f32 to vector<1x8xf32>
    %2 = arith.mulf %1, %0 : vector<1x8xf32>
    %cst_1 = arith.constant 4.5399931E-5 : f32
    %3 = vector.broadcast %cst_1 : f32 to vector<1x8xf32>
    %4 = arith.addf %2, %3 : vector<1x8xf32>
    %5 = math.sin %4 : vector<1x8xf32>
    %6 = math.cos %4 : vector<1x8xf32>
    %7 = arith.divf %5, %6 : vector<1x8xf32>
    %8 = math.log %7 : vector<1x8xf32>
    %cst_2 = arith.constant -2.000000e+00 : f32
    %9 = vector.broadcast %cst_2 : f32 to vector<1x8xf32>
    %10 = arith.mulf %9, %8 : vector<1x8xf32>
    %11 = arith.negf %10 : vector<1x8xf32>
    %12 = math.exp %11 : vector<1x8xf32>
    %cst_3 = arith.constant 1.000000e+00 : f32
    %13 = vector.broadcast %cst_3 : f32 to vector<1x8xf32>
    %14 = arith.addf %13, %12 : vector<1x8xf32>
    %15 = arith.divf %13, %14 : vector<1x8xf32>
    %cst_4 = arith.constant 1.000000e+00 : f32
    %16 = vector.broadcast %cst_4 : f32 to vector<1x8xf32>
    %17 = arith.subf %16, %15 : vector<1x8xf32>
    %c0_5 = arith.constant 0 : index
    %c0_6 = arith.constant 0 : index
    %18 = vector.load %arg1[%c0_5, %c0_6] : memref<3x8xf32, #tpu.memory_space<vmem>>, vector<1x8xf32>
    tpu.vector_store %arg1[%c0_5, %c0_6], %10 {strides = array<i32>} : memref<3x8xf32, #tpu.memory_space<vmem>>, vector<1x8xf32>,
    %c1 = arith.constant 1 : index
    %c0_7 = arith.constant 0 : index
    %19 = vector.load %arg1[%c1, %c0_7] : memref<3x8xf32, #tpu.memory_space<vmem>>, vector<1x8xf32>
    tpu.vector_store %arg1[%c1, %c0_7], %15 {strides = array<i32>} : memref<3x8xf32, #tpu.memory_space<vmem>>, vector<1x8xf32>,
    %c2 = arith.constant 2 : index
    %c0_8 = arith.constant 0 : index
    %20 = vector.load %arg1[%c2, %c0_8] : memref<3x8xf32, #tpu.memory_space<vmem>>, vector<1x8xf32>
    tpu.vector_store %arg1[%c2, %c0_8], %17 {strides = array<i32>} : memref<3x8xf32, #tpu.memory_space<vmem>>, vector<1x8xf32>,
    return
  }
}

</mosaic_0001>

<bundles_post_ra>
// kernel: tpu_custom_call.1
= control target key start
LH: loop header
LB: loop body
LE: loop exit
PB: predicated region body
PF: predicated region fallthrough
CT: control target
= control target key end

     0   :  { %6 = vsyncpa [#allocation3], 0  ;;  %s406_s0 = inlined_call_operand.hbm [shape: f32[1,8], index: 0, kind: input, shape index: {}]   ;;  %s407_s1 = inlined_call_operand.hbm [shape: f32[3,8], index: 1, kind: output, shape index: {}]  }
   0x1   :  { %7 = vsyncpa [#allocation4], 0  ;;  %s343_s6 = smov [#allocation2]   ;;  %s295_s10 = scalar_lea.hbm %s406_s0, 16 }
   0x2   :  { %s14_s7 = sshll.u32 %s343_s6, 4  ;;  %p296_p0 = scmp.ne.s32.totalorder %s406_s0, %s295_s10  ;;  %s15_s7 = int_to_ptr.vmem [resolvable:$true] %s14_s7 }
   0x3   :  { %p299_p1 = scmp.lt.u32.totalorder %s295_s10, %s406_s0 }
   0x5   :  { %p301_p2 = pnand %p299_p1, %p296_p0 }
   0x7   :  { %304 = shalt.err (!%p301_p2)
}
   0x8   :  { %s305_s15 = scalar_lea.vmem %s15_s7, 16  ;;  %s309_s16 = scalar_lea.vmem %s15_s7, 32 }
   0x9   :  { %p306_p3 = scmp.ne.s32.totalorder %s15_s7, %s305_s15  ;;  %p310_p4 = scmp.lt.s32.totalorder %s15_s7, %s15_s7 }
   0xa   :  { %p311_p5 = scmp.lt.s32.totalorder %s309_s16, %s305_s15 }
   0xc   :  { %p312_p6 = por %p311_p5, %p310_p4 }
   0xe   :  { %p313_p7 = pnand %p312_p6, %p306_p3 }
  0x10   :  { %316 = shalt.err (!%p313_p7)
}
  0x11   :  { %17 = dma.hbm_to_vmem [thread:$0]  %s406_s0, 16, %s15_s7, [#allocation3]  }
  0x12   :  { %339 = dma.done.wait [#allocation3], 16  }
  0x13   :  { %340 = vsyncadd [#allocation3], 4294967280  ;;  %v21_v0 = vld [vmem:[#allocation2] sm:$0x1]  ;;  %v344_v14 = vmov 683565275  }
  0x14   :  { %v22_v1 = vmul.f32 1.5707055, %v21_v0  ;;  %v345_v16 = vmov 2475754826   ;;  %v346_v18 = vmov 2131351028  }
  0x15   :  { %v347_v20 = vmov 2102212464   ;;  %v348_v22 = vmov 920167782   ;;  %v349_v29 = vmov 1326507024  }
  0x16   :  { %v373_v2 = vadd.f32 4.539993e-05, %v22_v1  ;;  %s350_s0 = smov [#allocation5]  }
  0x17   :  { %s253_s19 = sshll.u32 %s350_s0, 4  ;;  %s254_s19 = int_to_ptr.vmem [resolvable:$true] %s253_s19 }
  0x18   :  { %v27_v3 = vand.u32 2139095040, %v373_v2  ;;  %v24_v5 = vand.u32 2147483647, %v373_v2  ;;  %vm26_vm7 = vcmp.lt.s32.totalorder %v373_v2, 0  ;;  %vm116_vm12 = vweird.f32 %v373_v2  ;;  %s317_s20 = scalar_lea.vmem %s254_s19, 64  ;;  %p322_p9 = scmp.lt.s32.totalorder %s254_s19, %s254_s19 }
  0x19   :  { %p318_p8 = scmp.ne.s32.totalorder %s254_s19, %s317_s20  ;;  %p323_p10 = scmp.lt.s32.totalorder %s317_s20, %s317_s20 }
  0x1a   :  { %v28_v4 = vshrl.u32 %v27_v3, 23  ;;  %v31_v8 = vand.u32 8388607, %v24_v5  ;;  %vm25_vm8 = vcmp.le.f32.partialorder %v24_v5, 0.7853982 }
  0x1b   :  { %p324_p11 = por %p323_p10, %p322_p9 }
  0x1c   :  { %v262_v6 = vadd.s32 4294967169, %v28_v4  ;;  %v32_v11 = vor.u32 8388608, %v31_v8 }
  0x1d   :  { %p325_p12 = pnand %p324_p11, %p318_p8 }
  0x1e   :  { %v34_v7 = vadd.s32 1, %v262_v6  ;;  %v72_v31 = vshll.u32 %v32_v11, 8 }
  0x20   :  { %vm35_vm0 = vcmp.gt.s32.totalorder %v34_v7, 0 }
  0x21   :  { %v36_v9 = vsel %vm35_vm0, %v34_v7, 0  ;;  %vm243_vm0 = vcmask 57344  }
  0x22   :  { %v38_v10 = vand.u32 31, %v36_v9  ;;  %v37_v12 = vshrl.u32 %v36_v9, 5 }
  0x24   :  { %v39_v13 = vsub.s32 32, %v38_v10  ;;  %v41_v15 = vshll.u32 %v344_v14, %v38_v10  ;;  %v44_v17 = vshll.u32 %v345_v16, %v38_v10  ;;  %v47_v19 = vshll.u32 %v346_v18, %v38_v10 }
  0x25   :  { %v50_v21 = vshll.u32 %v347_v20, %v38_v10  ;;  %v53_v23 = vshll.u32 %v348_v22, %v38_v10  ;;  %vm56_vm1 = vcmp.lt.s32.totalorder %v37_v12, 1  ;;  %vm59_vm2 = vcmp.lt.s32.totalorder %v37_v12, 4 }
  0x26   :  { %v40_v24 = vshrl.u32 %v344_v14, %v39_v13  ;;  %v42_v25 = vshrl.u32 %v345_v16, %v39_v13  ;;  %v45_v26 = vshrl.u32 %v346_v18, %v39_v13  ;;  %v48_v27 = vshrl.u32 %v347_v20, %v39_v13 }
  0x27   :  { %v51_v28 = vshrl.u32 %v348_v22, %v39_v13  ;;  %v54_v30 = vshrl.u32 %v349_v29, %v39_v13  ;;  %vm57_vm3 = vcmp.lt.s32.totalorder %v37_v12, 2  ;;  %vm58_vm4 = vcmp.lt.s32.totalorder %v37_v12, 3 }
  0x28   :  { %v43_v32 = vor.u32 %v42_v25, %v41_v15  ;;  %v46_v33 = vor.u32 %v45_v26, %v44_v17  ;;  %v49_v34 = vor.u32 %v48_v27, %v47_v19 }
  0x29   :  { %v52_v35 = vor.u32 %v51_v28, %v50_v21  ;;  %v55_v36 = vor.u32 %v54_v30, %v53_v23 }
  0x2a   :  { %v60_v37 = vsel %vm56_vm1, %v40_v24, %v43_v32  ;;  %v61_v38 = vsel %vm59_vm2, %v49_v34, 2102212464  ;;  %v64_v39 = vsel %vm56_vm1, %v43_v32, %v46_v33  ;;  %v68_v40 = vsel %vm56_vm1, %v46_v33, %v49_v34 }
  0x2b   :  { %v62_v41 = vsel %vm58_vm4, %v46_v33, %v61_v38  ;;  %v65_v42 = vsel %vm59_vm2, %v52_v35, 920167782  ;;  %v69_v43 = vsel %vm59_vm2, %v55_v36, 1326507024 }
  0x2c   :  { %v66_v44 = vsel %vm58_vm4, %v49_v34, %v65_v42  ;;  %v70_v45 = vsel %vm58_vm4, %v52_v35, %v69_v43  ;;  %v63_v46 = vsel %vm57_vm3, %v60_v37, %v62_v41 }
  0x2d   :  { %v67_v47 = vsel %vm57_vm3, %v64_v39, %v66_v44  ;;  %v71_v48 = vsel %vm57_vm3, %v68_v40, %v70_v45  ;;  %v79_v53 = vmul.u32 %v72_v31, %v63_v46 }
  0x2e   :  { %v379_v49 = vmul.u32.u64.low %v72_v31, %v71_v48  ;;  %v380_v50 = vmul.u32.u64.high %v72_v31, %v71_v48, %v379_v49  ;;  %v382_v51 = vmul.u32.u64.low %v72_v31, %v67_v47  ;;  %v383_v52 = vmul.u32.u64.high %v72_v31, %v67_v47, %v382_v51 }
  0x30   :  { %vm81_vm5 = vc.u32 %v380_v50, %v382_v51  ;;  %v82_v54 = vadd.s32 1, %v383_v52  ;;  %v80_v1 = vadd.s32 %v382_v51, %v380_v50 }
  0x32   :  { %v83_v55 = vsel %vm81_vm5, %v82_v54, %v383_v52 }
  0x33   :  { %v84_v56 = vadd.s32 %v83_v55, %v79_v53 }
  0x35   :  { %v85_v57 = vadd.s32 536870912, %v84_v56 }
  0x37   :  { %v86_v58 = vshrl.u32 %v85_v57, 30 }
  0x39   :  { %v87_v59 = vshll.u32 %v86_v58, 30  ;;  %v110_v17 = vsub.s32 4, %v86_v58 }
  0x3b   :  { %v88_v60 = vsub.s32 %v84_v56, %v87_v59  ;;  %v111_v20 = vsel %vm26_vm7, %v110_v17, %v86_v58 }
  0x3c   :  { %v113_v21 = vsel %vm25_vm8, 0, %v111_v20 }
  0x3d   :  { %v90_v61 = vsub.s32 0, %v88_v60  ;;  %v221_v22 = vand.u32 3, %v113_v21  ;;  %v117_v23 = vadd.s32 3, %v113_v21 }
  0x3f   :  { %v263_v62 = vmin.u32 %v90_v61, %v88_v60  ;;  %vm226_vm9 = vcmp.eq.s32.totalorder %v221_v22, 2  ;;  %vm223_vm10 = vcmp.eq.s32.totalorder %v221_v22, 0  ;;  %v118_v27 = vand.u32 3, %v117_v23 }
  0x40   :  { %vm222_vm11 = vcmp.lt.s32.totalorder %v221_v22, 2 }
  0x41   :  { %v92_v63 = vclz %v263_v62  ;;  %vm120_vm13 = vcmp.eq.s32.totalorder %v118_v27, 0  ;;  %vm123_vm14 = vcmp.eq.s32.totalorder %v118_v27, 2  ;;  %vm119_vm15 = vcmp.lt.s32.totalorder %v118_v27, 2 }
  0x43   :  { %v264_v0 = vadd.s32 4294967294, %v92_v63 }
  0x45   :  { %vm265_vm6 = vcmp.lt.s32.totalorder %v264_v0, 0 }
  0x46   :  { %v95_v3 = vsel %vm265_vm6, 0, %v264_v0 }
  0x47   :  { %v96_v4 = vsub.s32 32, %v95_v3  ;;  %v97_v6 = vshll.u32 %v88_v60, %v95_v3  ;;  %v100_v7 = vsub.s32 4294967266, %v95_v3 }
  0x49   :  { %v98_v8 = vshrl.u32 %v80_v1, %v96_v4  ;;  %v101_v9 = vadd.s32 127, %v100_v7 }
  0x4b   :  { %v99_v10 = vor.u32 %v98_v8, %v97_v6  ;;  %v102_v11 = vshll.u32 %v101_v9, 23 }
  0x4d   :  { %v103_v12 = vor.u32 4788187, %v102_v11  ;;  %v106_v13 = vcvt.s32.f32 %v99_v10 }
  0x4f   :  { %v104_v14 = vand.u32 2147483647, %v103_v12 }
  0x51   :  { %v107_v15 = vmul.f32 %v106_v13, %v104_v14 }
  0x53   :  { %v108_v16 = vxor.u32 2147483648, %v107_v15 }
  0x55   :  { %v109_v18 = vsel %vm26_vm7, %v108_v16, %v107_v15 }
  0x56   :  { %v112_v19 = vsel %vm25_vm8, %v373_v2, %v109_v18 }
  0x57   :  { %283 = vcosq.f32 %v112_v19 }
  0x58   :  { %285 = vsinq.f32 %v112_v19 }
  0x61   :  { %v284_v24 = vpop.eup %283 }
  0x62   :  { %v286_v25 = vpop.eup %285  ;;  %v124_v26 = vxor.u32 2147483648, %v284_v24 }
  0x63   :  { %v121_v28 = vxor.u32 2147483648, %v286_v25 }
  0x64   :  { %v228_v5 = vsel %vm226_vm9, %v124_v26, %v286_v25  ;;  %v125_v33 = vsel %vm123_vm14, %v124_v26, %v286_v25 }
  0x65   :  { %v225_v29 = vsel %vm223_vm10, %v284_v24, %v121_v28  ;;  %v122_v32 = vsel %vm120_vm13, %v284_v24, %v121_v28 }
  0x66   :  { %v229_v30 = vsel %vm222_vm11, %v225_v29, %v228_v5  ;;  %v126_v34 = vsel %vm119_vm15, %v122_v32, %v125_v33 }
  0x67   :  { %v230_v31 = vsel %vm116_vm12, nan, %v229_v30  ;;  %v127_v35 = vsel %vm116_vm12, nan, %v126_v34 }
  0x68   :  { %287 = vrcp.f32 %v230_v31 }
  0x72   :  { %v288_v36 = vpop.eup %287 }
  0x73   :  { %v232_v37 = vmul.f32 %v288_v36, %v127_v35 }
  0x75   :  { %289 = vlog2.f32 %v232_v37 }
  0x7f   :  { %v290_v38 = vpop.eup %289 }
  0x80   :  { %v234_v39 = vmul.f32 0.6931472, %v290_v38 }
  0x82   :  { %v235_v40 = vmul.f32 -2.0, %v234_v39  ;;  %v270_v2 = vmul.f32 2.0, %v234_v39 }
  0x84   :  { %v237_v41 = vmul.f32 1.442695, %v270_v2  ;;  %244 = vst.msk [vmem:[#allocation5] sm:$0x1] %vm243_vm0, %v235_v40 }
  0x86   :  { %291 = vpow2.f32 %v237_v41 }
  0x90   :  { %v292_v42 = vpop.eup %291 }
  0x91   :  { %v239_v43 = vadd.f32 1.0, %v292_v42 }
  0x93   :  { %293 = vrcp.f32 %v239_v43 }
  0x9d   :  { %v294_v44 = vpop.eup %293 }
  0x9e   :  { %245 = vst.msk [vmem:[#allocation5 + $0x1] sm:$0x1] %vm243_vm0, %v294_v44  ;;  %v242_v45 = vsub.f32 1.0, %v294_v44 }
  0xa0   :  { %246 = vst.msk [vmem:[#allocation5 + $0x2] sm:$0x1] %vm243_vm0, %v242_v45 }
  0xa1   :  { %328 = shalt.err (!%p325_p12)
}
  0xa2   :  { %s329_s23 = scalar_lea.hbm %s407_s1, 64 }
  0xa3   :  { %p330_p13 = scmp.ne.s32.totalorder %s407_s1, %s329_s23  ;;  %p333_p0 = scmp.lt.u32.totalorder %s329_s23, %s407_s1 }
  0xa5   :  { %p335_p1 = pnand %p333_p0, %p330_p13 }
  0xa7   :  { %338 = shalt.err (!%p335_p1)
}
  0xa8   :  { %256 = dma.vmem_to_hbm [thread:$0]  %s254_s19, 64, %s407_s1, [#allocation4]  }
  0xa9   :  { %341 = dma.done.wait [#allocation4], 64  }
  0xaa   :  { %342 = vsyncadd [#allocation4], 4294967232 }
  0xab   :  { %260 = vsyncpa [#allocation3], 1 }
  0xac   :  { %261 = vsyncpa [#allocation4], 1 }

</bundles_post_ra>
